<compile_context>
chip_gen: v7x
topology: tpu7x:2x2x1
jax: 0.10.0
libtpu: 0.0.40
codegen_flags: <defaults>
</compile_context>

<pallas_src>
import math
from functools import partial

import jax
import jax.numpy as jnp
from jax.experimental import pallas as pl
from jax.experimental.pallas import tpu as pltpu

NUM_CLASSES = 20          # cfg.MODEL.ROI_HEADS.NUM_CLASSES (background = NUM_CLASSES)
IOU_THRESHOLD = 0.5       # cfg.MODEL.ROI_HEADS.IOU_THRESHOLDS = [0.5], IOU_LABELS = [0, 1]
MAX_TN = 2048             # max lanes per tile (keeps vreg pressure bounded)

# Packed-key constants (plain Python ints -> jaxpr literals, NOT captured arrays).
# key = gt_row * _KEY_STRIDE + gt_class; requires 0 <= gt_class < _KEY_STRIDE.
_KEY_SHIFT = max(int(NUM_CLASSES).bit_length(), 1)   # 20 -> 5 bits
_KEY_STRIDE = 1 << _KEY_SHIFT                        # 32
_KEY_BIG = 1 << 30                                   # > any valid key


def _roi_match_kernel(gt_boxes_ref, gt_classes_ref, prop_ref,
                      iou_ref, idx_ref, lab_ref, cls_ref):
    """Per-tile: IoU of M_pad gt boxes vs TN proposals + matcher + class assignment."""
    # gt coords as [M_pad, 1] columns (broadcast along lanes / proposals)
    gx1 = gt_boxes_ref[:, 0:1]
    gy1 = gt_boxes_ref[:, 1:2]
    gx2 = gt_boxes_ref[:, 2:3]
    gy2 = gt_boxes_ref[:, 3:4]
    # proposal coords as [1, TN] rows (broadcast along sublanes / gt boxes)
    px1 = prop_ref[0:1, :]
    py1 = prop_ref[1:2, :]
    px2 = prop_ref[2:3, :]
    py2 = prop_ref[3:4, :]

    # pairwise intersection / union -> [M_pad, TN]   (pure VPU elementwise)
    iw = jnp.maximum(jnp.minimum(gx2, px2) - jnp.maximum(gx1, px1), 0.0)
    ih = jnp.maximum(jnp.minimum(gy2, py2) - jnp.maximum(gy1, py1), 0.0)
    inter = iw * ih
    area_g = (gx2 - gx1) * (gy2 - gy1)          # [M_pad, 1]
    area_p = (px2 - px1) * (py2 - py1)          # [1, TN]
    union = area_g + area_p - inter
    iou = jnp.where(inter > 0.0, inter / union, 0.0)   # detectron2 pairwise_iou semantics

    # --- XLU reduction #1: iou_with_gt = max over the gt axis ---
    matched_vals = jnp.max(iou, axis=0, keepdims=True)                  # [1, TN] f32
    is_max = iou == matched_vals                                        # [M_pad, TN]

    # --- XLU reduction #2: min over packed (row, class) key restricted to the
    # argmax rows. Smallest gt row on ties (== jnp.argmax semantics) and gives
    # matched_idxs + the gathered gt class in one reduction. Zero-area padded
    # gt rows have IoU 0 and larger row indices, so they can never win. ---
    row = jax.lax.broadcasted_iota(jnp.int32, iou.shape, 0)             # [M_pad, TN]
    key = row * _KEY_STRIDE + gt_classes_ref[:, 0:1]                    # [M_pad, TN] i32
    key = jnp.where(is_max, key, _KEY_BIG)
    min_key = jnp.min(key, axis=0, keepdims=True)                       # [1, TN] i32

    matched_idxs = min_key >> _KEY_SHIFT
    gathered = min_key & (_KEY_STRIDE - 1)                              # gt_classes[matched_idxs]

    # Matcher(thresholds=[0.5], labels=[0, 1], allow_low_quality_matches=False)
    matched_labels = (matched_vals >= IOU_THRESHOLD).astype(jnp.int32)
    cls = jnp.where(matched_labels == 0, NUM_CLASSES, gathered)

    # four lane-dense [1, TN] outputs in native dtypes
    iou_ref[...] = matched_vals
    idx_ref[...] = matched_idxs
    lab_ref[...] = matched_labels
    cls_ref[...] = cls


def _default_num_tiles(n):
    """1 grid step on single-TC chips (v5e/v6e); 2 parallel steps on v7x (2 TCs)."""
    try:
        kind = jax.devices()[0].device_kind.lower()
    except Exception:  # pragma: no cover - e.g. interpret mode / no TPU visible
        kind = ""
    tiles = 2 if ("v7" in kind and n >= 256) else 1
    tiles = max(tiles, -(-n // MAX_TN))   # split very large N into <= MAX_TN tiles
    return tiles


@partial(jax.jit, static_argnames=("num_tiles",))
def _match_padded(gt_boxes, gt_classes, proposal_boxes, num_tiles):
    """Pad/transpose + pallas_call + slice-back, all inside one jit."""
    M = gt_boxes.shape[0]
    N = proposal_boxes.shape[0]

    # Bucket M to a power of two >= 8 so distinct gt counts share compilations
    # and the gt axis is sublane-aligned. Padded rows: zero-area boxes, class 0.
    m_pad = 8
    while m_pad < M:
        m_pad *= 2
    if m_pad != M:
        gt_boxes = jnp.pad(gt_boxes, ((0, m_pad - M), (0, 0)))
        gt_classes = jnp.pad(gt_classes, ((0, m_pad - M),))
    gt_cls_col = gt_classes.reshape(m_pad, 1)

    # Pad N to a multiple of 128 * num_tiles; zero-area pad proposals -> IoU 0.
    align = 128 * num_tiles
    n_pad = ((N + align - 1) // align) * align
    props = proposal_boxes
    if n_pad != N:
        props = jnp.pad(props, ((0, n_pad - N), (0, 0)))
    props_t = props.T                                   # [4, n_pad] coordinate-major
    tn = n_pad // num_tiles

    out_spec = pl.BlockSpec((1, tn), lambda i: (0, i))
    iou, midx, mlab, cls = pl.pallas_call(
        _roi_match_kernel,
        out_shape=(
            jax.ShapeDtypeStruct((1, n_pad), jnp.float32),
            jax.ShapeDtypeStruct((1, n_pad), jnp.int32),
            jax.ShapeDtypeStruct((1, n_pad), jnp.int32),
            jax.ShapeDtypeStruct((1, n_pad), jnp.int32),
        ),
        grid_spec=pltpu.PrefetchScalarGridSpec(
            num_scalar_prefetch=0,
            grid=(num_tiles,),
            in_specs=[
                pl.BlockSpec((m_pad, 4), lambda i: (0, 0)),   # gt boxes (resident)
                pl.BlockSpec((m_pad, 1), lambda i: (0, 0)),   # gt classes (resident)
                pl.BlockSpec((4, tn), lambda i: (0, i)),      # proposal tile
            ],
            out_specs=[out_spec, out_spec, out_spec, out_spec],
        ),
        compiler_params=pltpu.CompilerParams(
            dimension_semantics=("parallel",)),
    )(gt_boxes, gt_cls_col, props_t)

    return iou[0, :N], midx[0, :N], mlab[0, :N], cls[0, :N]


def roi_heads_oln_match(gt_boxes, gt_classes, proposal_boxes, num_tiles=None):
    """Pallas-accelerated matching stage of ROIHeads_OLN.label_and_sample_proposals.

    Args:
      gt_boxes:        [M, 4] float32 (x1, y1, x2, y2)
      gt_classes:      [M]    int32, values in [0, NUM_CLASSES) (< _KEY_STRIDE)
      proposal_boxes:  [N, 4] float32 (any N; padded internally)
    Returns:
      iou_with_gt [N] f32, matched_idxs [N] i32, matched_labels [N] i32,
      per-proposal gt class labels [N] i32 (background == NUM_CLASSES).
    """
    M = int(gt_boxes.shape[0])
    N = int(proposal_boxes.shape[0])

    if M == 0:
        # detectron2 _sample_proposals with no gt: everything is background.
        return (jnp.zeros((N,), jnp.float32),
                jnp.zeros((N,), jnp.int32),
                jnp.zeros((N,), jnp.int32),
                jnp.full((N,), NUM_CLASSES, jnp.int32))

    if num_tiles is None:
        num_tiles = _default_num_tiles(N)

    return _match_padded(gt_boxes.astype(jnp.float32),
                         gt_classes.astype(jnp.int32),
                         proposal_boxes.astype(jnp.float32),
                         num_tiles)


# TODO(synk): subsample_labels (randperm-based fg/bg sampling) and the Instances
# bookkeeping of label_and_sample_proposals have no clean Pallas equivalent.
# TODO(synk): batching multiple images into one pallas_call (leading grid axis)
# is the next end-to-end lever; left to the caller's batching structure.
# TODO(synk): if M can exceed ~32 per image, chunk the gt axis with a running
# max / running min-key fori_loop to keep vreg pressure flat.


def _reference(gt_boxes, gt_classes, proposal_boxes):
    """Pure-JAX reference for correctness checking."""
    gx1, gy1, gx2, gy2 = [gt_boxes[:, i][:, None] for i in range(4)]
    px1, py1, px2, py2 = [proposal_boxes[:, i][None, :] for i in range(4)]
    iw = jnp.maximum(jnp.minimum(gx2, px2) - jnp.maximum(gx1, px1), 0.0)
    ih = jnp.maximum(jnp.minimum(gy2, py2) - jnp.maximum(gy1, py1), 0.0)
    inter = iw * ih
    union = (gx2 - gx1) * (gy2 - gy1) + (px2 - px1) * (py2 - py1) - inter
    iou = jnp.where(inter > 0.0, inter / union, 0.0)
    vals = iou.max(axis=0)
    idxs = iou.argmax(axis=0).astype(jnp.int32)
    labels = (vals >= IOU_THRESHOLD).astype(jnp.int32)
    cls = jnp.where(labels == 0, NUM_CLASSES, gt_classes[idxs].astype(jnp.int32))
    return vals, idxs, labels, cls


if __name__ == "__main__":
    key = jax.random.PRNGKey(0)
    k1, k2, k3, k4 = jax.random.split(key, 4)

    M, N = 5, 1000  # 5 gt boxes, 1000 proposals

    # deterministic synthetic boxes: (x1, y1) + positive (w, h) -> (x1, y1, x2, y2)
    gt_xy = jax.random.uniform(k1, (M, 2), minval=0.0, maxval=80.0)
    gt_wh = jax.random.uniform(k2, (M, 2), minval=8.0, maxval=48.0)
    gt_boxes = jnp.concatenate([gt_xy, gt_xy + gt_wh], axis=1).astype(jnp.float32)
    gt_classes = (jax.random.uniform(k3, (M,)) * NUM_CLASSES).astype(jnp.int32)

    pr_xy = jax.random.uniform(k4, (N, 2), minval=0.0, maxval=96.0)
    pr_wh = jax.random.uniform(jax.random.fold_in(k4, 1), (N, 2), minval=4.0, maxval=64.0)
    proposal_boxes = jnp.concatenate([pr_xy, pr_xy + pr_wh], axis=1).astype(jnp.float32)

    ref_iou, ref_idx, ref_lab, ref_cls = _reference(gt_boxes, gt_classes, proposal_boxes)

    # default tiling (1 step on v5e/v6e, 2 parallel steps on v7x)
    out = roi_heads_oln_match(gt_boxes, gt_classes, proposal_boxes)
    iou, midx, mlab, cls = jax.block_until_ready(out)
    assert iou.shape == (N,) and midx.shape == (N,)
    assert jnp.allclose(iou, ref_iou, atol=1e-6), "iou mismatch"
    assert jnp.array_equal(midx, ref_idx), "matched_idxs mismatch"
    assert jnp.array_equal(mlab, ref_lab), "matched_labels mismatch"
    assert jnp.array_equal(cls, ref_cls), "gt_classes mismatch"

    # explicit 2-tile grid (v7x path) must give identical results
    out2 = roi_heads_oln_match(gt_boxes, gt_classes, proposal_boxes, num_tiles=2)
    iou2, midx2, mlab2, cls2 = jax.block_until_ready(out2)
    assert jnp.allclose(iou2, ref_iou, atol=1e-6), "iou mismatch (2 tiles)"
    assert jnp.array_equal(midx2, ref_idx), "matched_idxs mismatch (2 tiles)"
    assert jnp.array_equal(mlab2, ref_lab), "matched_labels mismatch (2 tiles)"
    assert jnp.array_equal(cls2, ref_cls), "gt_classes mismatch (2 tiles)"

    # empty-gt path (has_gt == False): everything background
    e_iou, e_idx, e_lab, e_cls = roi_heads_oln_match(
        jnp.zeros((0, 4), jnp.float32), jnp.zeros((0,), jnp.int32), proposal_boxes)
    e_cls = jax.block_until_ready(e_cls)
    assert jnp.array_equal(e_cls, jnp.full((N,), NUM_CLASSES, jnp.int32)), "empty-gt mismatch"

    print("KERNEL_OK")
</pallas_src>

<mosaic_0001>
module attributes {stable_mosaic.version = 11 : i64} {
  func.func @_roi_match_kernel(%arg0: i32, %arg1: memref<8x4xf32, #tpu.memory_space<vmem>>, %arg2: memref<8x1xi32, #tpu.memory_space<vmem>>, %arg3: memref<4x1024xf32, #tpu.memory_space<vmem>>, %arg4: memref<1x1024xf32, #tpu.memory_space<vmem>>, %arg5: memref<1x1024xi32, #tpu.memory_space<vmem>>, %arg6: memref<1x1024xi32, #tpu.memory_space<vmem>>, %arg7: memref<1x1024xi32, #tpu.memory_space<vmem>>) attributes {dimension_semantics = [#tpu.dimension_semantics<parallel>], iteration_bounds = array<i64: 1>, scalar_prefetch = 0 : i64, scratch_operands = 0 : i64, tpu.core_type = #tpu.core_type<tc>, window_params = [{pipeline_mode = #tpu.pipeline_mode<synchronous>, transform_indices = @transform_0, window_bounds = array<i64: 8, 4>}, {pipeline_mode = #tpu.pipeline_mode<synchronous>, transform_indices = @transform_1, window_bounds = array<i64: 8, 1>}, {transform_indices = @transform_2, window_bounds = array<i64: 4, 1024>}, {transform_indices = @transform_3, window_bounds = array<i64: 1, 1024>}, {transform_indices = @transform_4, window_bounds = array<i64: 1, 1024>}, {transform_indices = @transform_5, window_bounds = array<i64: 1, 1024>}, {transform_indices = @transform_6, window_bounds = array<i64: 1, 1024>}]} {
    %c0 = arith.constant 0 : index
    %c0_0 = arith.constant 0 : index
    %0 = vector.load %arg1[%c0, %c0_0] : memref<8x4xf32, #tpu.memory_space<vmem>>, vector<8x1xf32>
    %c0_1 = arith.constant 0 : index
    %c1 = arith.constant 1 : index
    %1 = vector.load %arg1[%c0_1, %c1] : memref<8x4xf32, #tpu.memory_space<vmem>>, vector<8x1xf32>
    %c0_2 = arith.constant 0 : index
    %c2 = arith.constant 2 : index
    %2 = vector.load %arg1[%c0_2, %c2] : memref<8x4xf32, #tpu.memory_space<vmem>>, vector<8x1xf32>
    %c0_3 = arith.constant 0 : index
    %c3 = arith.constant 3 : index
    %3 = vector.load %arg1[%c0_3, %c3] : memref<8x4xf32, #tpu.memory_space<vmem>>, vector<8x1xf32>
    %c0_4 = arith.constant 0 : index
    %c0_5 = arith.constant 0 : index
    %4 = vector.load %arg3[%c0_4, %c0_5] : memref<4x1024xf32, #tpu.memory_space<vmem>>, vector<1x1024xf32>
    %c1_6 = arith.constant 1 : index
    %c0_7 = arith.constant 0 : index
    %5 = vector.load %arg3[%c1_6, %c0_7] : memref<4x1024xf32, #tpu.memory_space<vmem>>, vector<1x1024xf32>
    %c2_8 = arith.constant 2 : index
    %c0_9 = arith.constant 0 : index
    %6 = vector.load %arg3[%c2_8, %c0_9] : memref<4x1024xf32, #tpu.memory_space<vmem>>, vector<1x1024xf32>
    %c3_10 = arith.constant 3 : index
    %c0_11 = arith.constant 0 : index
    %7 = vector.load %arg3[%c3_10, %c0_11] : memref<4x1024xf32, #tpu.memory_space<vmem>>, vector<1x1024xf32>
    %8 = vector.broadcast %2 : vector<8x1xf32> to vector<8x1024xf32>
    %9 = vector.broadcast %6 : vector<1x1024xf32> to vector<8x1024xf32>
    %10 = arith.minimumf %8, %9 : vector<8x1024xf32>
    %11 = vector.broadcast %0 : vector<8x1xf32> to vector<8x1024xf32>
    %12 = vector.broadcast %4 : vector<1x1024xf32> to vector<8x1024xf32>
    %13 = arith.maximumf %11, %12 : vector<8x1024xf32>
    %14 = arith.subf %10, %13 : vector<8x1024xf32>
    %cst = arith.constant 0.000000e+00 : f32
    %15 = vector.broadcast %cst : f32 to vector<8x1024xf32>
    %16 = arith.maximumf %14, %15 : vector<8x1024xf32>
    %17 = vector.broadcast %3 : vector<8x1xf32> to vector<8x1024xf32>
    %18 = vector.broadcast %7 : vector<1x1024xf32> to vector<8x1024xf32>
    %19 = arith.minimumf %17, %18 : vector<8x1024xf32>
    %20 = vector.broadcast %1 : vector<8x1xf32> to vector<8x1024xf32>
    %21 = vector.broadcast %5 : vector<1x1024xf32> to vector<8x1024xf32>
    %22 = arith.maximumf %20, %21 : vector<8x1024xf32>
    %23 = arith.subf %19, %22 : vector<8x1024xf32>
    %cst_12 = arith.constant 0.000000e+00 : f32
    %24 = vector.broadcast %cst_12 : f32 to vector<8x1024xf32>
    %25 = arith.maximumf %23, %24 : vector<8x1024xf32>
    %26 = arith.mulf %16, %25 : vector<8x1024xf32>
    %27 = arith.subf %2, %0 : vector<8x1xf32>
    %28 = arith.subf %3, %1 : vector<8x1xf32>
    %29 = arith.mulf %27, %28 : vector<8x1xf32>
    %30 = arith.subf %6, %4 : vector<1x1024xf32>
    %31 = arith.subf %7, %5 : vector<1x1024xf32>
    %32 = arith.mulf %30, %31 : vector<1x1024xf32>
    %33 = vector.broadcast %29 : vector<8x1xf32> to vector<8x1024xf32>
    %34 = vector.broadcast %32 : vector<1x1024xf32> to vector<8x1024xf32>
    %35 = arith.addf %33, %34 : vector<8x1024xf32>
    %36 = arith.subf %35, %26 : vector<8x1024xf32>
    %cst_13 = arith.constant 0.000000e+00 : f32
    %37 = vector.broadcast %cst_13 : f32 to vector<8x1024xf32>
    %38 = arith.cmpf ogt, %26, %37 : vector<8x1024xf32>
    %39 = arith.divf %26, %36 : vector<8x1024xf32>
    %cst_14 = arith.constant 0.000000e+00 : f32
    %40 = vector.broadcast %cst_14 : f32 to vector<8x1024xf32>
    %41 = arith.select %38, %39, %40 : vector<8x1024xi1>, vector<8x1024xf32>
    %cst_15 = arith.constant dense<0xFF800000> : vector<1024xf32>
    %42 = vector.multi_reduction <maximumf>, %41, %cst_15 [0] : vector<8x1024xf32> to vector<1024xf32>
    %43 = vector.shape_cast %42 : vector<1024xf32> to vector<1x1024xf32>
    %44 = vector.broadcast %43 : vector<1x1024xf32> to vector<8x1024xf32>
    %45 = arith.cmpf oeq, %41, %44 : vector<8x1024xf32>
    %46 = tpu.iota {dimensions = array<i32: 0>} : vector<8x1024xi32>
    %c32_i32 = arith.constant 32 : i32
    %47 = vector.broadcast %c32_i32 : i32 to vector<8x1024xi32>
    %48 = arith.muli %46, %47 : vector<8x1024xi32>
    %c0_16 = arith.constant 0 : index
    %c0_17 = arith.constant 0 : index
    %49 = vector.load %arg2[%c0_16, %c0_17] : memref<8x1xi32, #tpu.memory_space<vmem>>, vector<8x1xi32>
    %50 = vector.broadcast %49 : vector<8x1xi32> to vector<8x1024xi32>
    %51 = arith.addi %48, %50 : vector<8x1024xi32>
    %c1073741824_i32 = arith.constant 1073741824 : i32
    %52 = vector.broadcast %c1073741824_i32 : i32 to vector<8x1024xi32>
    %53 = arith.select %45, %51, %52 : vector<8x1024xi1>, vector<8x1024xi32>
    %cst_18 = arith.constant dense<2147483647> : vector<1024xi32>
    %54 = vector.multi_reduction <minsi>, %53, %cst_18 [0] : vector<8x1024xi32> to vector<1024xi32>
    %55 = vector.shape_cast %54 : vector<1024xi32> to vector<1x1024xi32>
    %c5_i32 = arith.constant 5 : i32
    %56 = vector.broadcast %c5_i32 : i32 to vector<1x1024xi32>
    %57 = arith.shrsi %55, %56 : vector<1x1024xi32>
    %c31_i32 = arith.constant 31 : i32
    %58 = vector.broadcast %c31_i32 : i32 to vector<1x1024xi32>
    %59 = arith.andi %55, %58 : vector<1x1024xi32>
    %cst_19 = arith.constant 5.000000e-01 : f32
    %60 = vector.broadcast %cst_19 : f32 to vector<1x1024xf32>
    %61 = arith.cmpf oge, %43, %60 : vector<1x1024xf32>
    %62 = arith.extui %61 : vector<1x1024xi1> to vector<1x1024xi32>
    %c0_i32 = arith.constant 0 : i32
    %63 = vector.broadcast %c0_i32 : i32 to vector<1x1024xi32>
    %64 = arith.cmpi eq, %62, %63 : vector<1x1024xi32>
    %c20_i32 = arith.constant 20 : i32
    %65 = vector.broadcast %c20_i32 : i32 to vector<1x1024xi32>
    %66 = arith.select %64, %65, %59 : vector<1x1024xi1>, vector<1x1024xi32>
    %c0_20 = arith.constant 0 : index
    %c0_21 = arith.constant 0 : index
    %67 = vector.load %arg4[%c0_20, %c0_21] : memref<1x1024xf32, #tpu.memory_space<vmem>>, vector<1x1024xf32>
    tpu.vector_store %arg4[%c0_20, %c0_21], %43 {strides = array<i32>} : memref<1x1024xf32, #tpu.memory_space<vmem>>, vector<1x1024xf32>,
    %c0_22 = arith.constant 0 : index
    %c0_23 = arith.constant 0 : index
    %68 = vector.load %arg5[%c0_22, %c0_23] : memref<1x1024xi32, #tpu.memory_space<vmem>>, vector<1x1024xi32>
    tpu.vector_store %arg5[%c0_22, %c0_23], %57 {strides = array<i32>} : memref<1x1024xi32, #tpu.memory_space<vmem>>, vector<1x1024xi32>,
    %c0_24 = arith.constant 0 : index
    %c0_25 = arith.constant 0 : index
    %69 = vector.load %arg6[%c0_24, %c0_25] : memref<1x1024xi32, #tpu.memory_space<vmem>>, vector<1x1024xi32>
    tpu.vector_store %arg6[%c0_24, %c0_25], %62 {strides = array<i32>} : memref<1x1024xi32, #tpu.memory_space<vmem>>, vector<1x1024xi32>,
    %c0_26 = arith.constant 0 : index
    %c0_27 = arith.constant 0 : index
    %70 = vector.load %arg7[%c0_26, %c0_27] : memref<1x1024xi32, #tpu.memory_space<vmem>>, vector<1x1024xi32>
    tpu.vector_store %arg7[%c0_26, %c0_27], %66 {strides = array<i32>} : memref<1x1024xi32, #tpu.memory_space<vmem>>, vector<1x1024xi32>,
    return
  }
  func.func @transform_0(%arg0: i32) -> (i32, i32) {
    %c0_i32 = arith.constant 0 : i32
    %c0_i32_0 = arith.constant 0 : i32
    %c0_i32_1 = arith.constant 0 : i32
    return %c0_i32, %c0_i32_0 : i32, i32
  }
  func.func @transform_1(%arg0: i32) -> (i32, i32) {
    %c0_i32 = arith.constant 0 : i32
    %c0_i32_0 = arith.constant 0 : i32
    %c0_i32_1 = arith.constant 0 : i32
    return %c0_i32, %c0_i32_0 : i32, i32
  }
  func.func @transform_2(%arg0: i32) -> (i32, i32) {
    %c0_i32 = arith.constant 0 : i32
    %c0_i32_0 = arith.constant 0 : i32
    return %c0_i32, %arg0 : i32, i32
  }
  func.func @transform_3(%arg0: i32) -> (i32, i32) {
    %c0_i32 = arith.constant 0 : i32
    %c0_i32_0 = arith.constant 0 : i32
    return %c0_i32, %arg0 : i32, i32
  }
  func.func @transform_4(%arg0: i32) -> (i32, i32) {
    %c0_i32 = arith.constant 0 : i32
    %c0_i32_0 = arith.constant 0 : i32
    return %c0_i32, %arg0 : i32, i32
  }
  func.func @transform_5(%arg0: i32) -> (i32, i32) {
    %c0_i32 = arith.constant 0 : i32
    %c0_i32_0 = arith.constant 0 : i32
    return %c0_i32, %arg0 : i32, i32
  }
  func.func @transform_6(%arg0: i32) -> (i32, i32) {
    %c0_i32 = arith.constant 0 : i32
    %c0_i32_0 = arith.constant 0 : i32
    return %c0_i32, %arg0 : i32, i32
  }
}

</mosaic_0001>

<bundles_post_ra>
// kernel: _match_padded.1
= control target key start
LH: loop header
LB: loop body
LE: loop exit
PB: predicated region body
PF: predicated region fallthrough
CT: control target
= control target key end

     0   :  { %12 = vsyncpa [#allocation3], 0  ;;  %s1424_s0 = inlined_call_operand.vmem [shape: f32[8,4], index: 0, kind: input, shape index: {}]   ;;  %s1425_s1 = inlined_call_operand.vmem [shape: s32[8,1], index: 1, kind: input, shape index: {}]   ;;  %s1426_s2 = inlined_call_operand.vmem [shape: f32[4,1024], index: 2, kind: input, shape index: {}]   ;;  %s1427_s3 = inlined_call_operand.hbm [shape: f32[1,1024], index: 3, kind: output, shape index: {0}]   ;;  %s1428_s4 = inlined_call_operand.hbm [shape: s32[1,1024], index: 4, kind: output, shape index: {1}]   ;;  %s1429_s5 = inlined_call_operand.hbm [shape: s32[1,1024], index: 5, kind: output, shape index: {2}]   ;;  %s1430_s6 = inlined_call_operand.hbm [shape: s32[1,1024], index: 6, kind: output, shape index: {3}]  }
   0x1   :  { %13 = vsyncpa [#allocation5], 0  ;;  %v21_v0 = vld [vmem:[%s1424_s0] sm:$0xff]  ;;  %s990_s23 = smov 2   ;;  %v991_v1 = vmov 2  }
   0x2   :  { %282 = vrot.lane.b32.xlu0 %v21_v0, %s990_s23  ;;  %874 = vset.pattern.permute.xlu1 %v991_v1 }
   0x3   :  { %14 = vsyncpa [#allocation8], 0  ;;  %31 = vperm.xlu1 %874, %v21_v0   ;;  %v992_v2 = vmov 3   ;;  %v1431_v3 = vmov 0   ;;  %v994_v4 = vmov 1   ;;  %s995_s24 = smov 127   ;;  %v35_v10 = vlaneseq }
   0x4   :  { %876 = vset.pattern.permute.xlu0 %v992_v2  ;;  %v447_v7 = vld [vmem:[%s1425_s1] sm:$0xff]  ;;  %s998_s10 = smov [#allocation4]  }
   0x5   :  { %v1044_v11 = vshrl.u32 %v35_v10, 7  ;;  %v845_v14 = vld [vmem:[%s1426_s2 + $0x2] ss:$4 sm:$0xff]  ;;  %v22_v22 = vld [vmem:[%s1426_s2] ss:$4 sm:$0xff]  ;;  %s805_s11 = sshll.u32 %s998_s10, 4  ;;  %s1329_s11 = int_to_ptr.vmem [resolvable:$true] %s805_s11 }
   0x6   :  { %v1089_v33 = vld [vmem:[%s1426_s2 + $0x1] ss:$4 sm:$0xff]  ;;  %v1094_v34 = vld [vmem:[%s1426_s2 + $0x3] ss:$4 sm:$0xff]  ;;  %v291_v37 = vsub.f32 %v845_v14, %v22_v22  ;;  %s997_s2 = smov [#allocation2]  }
   0x7   :  { %875 = vset.pattern.permute.xlu1 %v1431_v3  ;;  %1435 = vst [vmem:[#allocation12_spill] sm:$0xff] %v1044_v11  ;;  %v1047_v12 = vsub.s32 0, %v1044_v11  ;;  %v1050_v13 = vsub.s32 1, %v1044_v11  ;;  %v1056_v15 = vsub.s32 2, %v1044_v11  ;;  %v1059_v16 = vsub.s32 3, %v1044_v11  ;;  %s795_s9 = sshll.u32 %s997_s2, 4  ;;  %s796_s9 = int_to_ptr.vmem [resolvable:$true] %s795_s9 }
   0x8   :  { %84 = vperm.xlu1 %875, %v21_v0   ;;  %v1062_v17 = vsub.s32 4, %v1044_v11  ;;  %v1065_v18 = vsub.s32 5, %v1044_v11  ;;  %v1068_v19 = vsub.s32 6, %v1044_v11  ;;  %v1071_v20 = vsub.s32 7, %v1044_v11  ;;  %s896_s12 = scalar_lea.vmem %s796_s9, 128  ;;  %p901_p1 = scmp.lt.s32.totalorder %s796_s9, %s796_s9 }
   0x9   :  { %v38_v23 = vrot.slane %v845_v14, %v1047_v12  ;;  %v42_v24 = vrot.slane %v845_v14, %v1050_v13  ;;  %v46_v25 = vrot.slane %v845_v14, %v1056_v15  ;;  %v50_v26 = vrot.slane %v845_v14, %v1059_v16  ;;  %p897_p0 = scmp.ne.s32.totalorder %s796_s9, %s896_s12  ;;  %p902_p2 = scmp.lt.s32.totalorder %s896_s12, %s896_s12 }
   0xa   :  { %v54_v27 = vrot.slane %v845_v14, %v1062_v17  ;;  %v58_v28 = vrot.slane %v845_v14, %v1065_v18  ;;  %v62_v29 = vrot.slane %v845_v14, %v1068_v19  ;;  %v66_v30 = vrot.slane %v845_v14, %v1071_v20 }
   0xb   :  { %v91_v31 = vrot.slane %v22_v22, %v1047_v12  ;;  %v95_v32 = vrot.slane %v22_v22, %v1050_v13  ;;  %v99_v35 = vrot.slane %v22_v22, %v1056_v15  ;;  %v103_v36 = vrot.slane %v22_v22, %v1059_v16  ;;  %p903_p3 = por %p902_p2, %p901_p1 }
   0xc   :  { %877 = vset.pattern.permute.xlu1 %v994_v4  ;;  %v292_v38 = vsub.f32 %v1094_v34, %v1089_v33  ;;  %v107_v39 = vrot.slane %v22_v22, %v1062_v17  ;;  %v111_v40 = vrot.slane %v22_v22, %v1065_v18  ;;  %v115_v41 = vrot.slane %v22_v22, %v1068_v19 }
   0xd   :  { %206 = vperm.xlu1 %877, %v21_v0   ;;  %v119_v42 = vrot.slane %v22_v22, %v1071_v20  ;;  %v213_v44 = vrot.slane %v1089_v33, %v1047_v12  ;;  %v217_v45 = vrot.slane %v1089_v33, %v1050_v13  ;;  %v221_v46 = vrot.slane %v1089_v33, %v1056_v15  ;;  %p904_p4 = pnand %p903_p3, %p897_p0 }
   0xe   :  { %v225_v47 = vrot.slane %v1089_v33, %v1059_v16  ;;  %v229_v48 = vrot.slane %v1089_v33, %v1062_v17  ;;  %v233_v49 = vrot.slane %v1089_v33, %v1065_v18  ;;  %v237_v50 = vrot.slane %v1089_v33, %v1068_v19 }
   0xf   :  { %v241_v51 = vrot.slane %v1089_v33, %v1071_v20  ;;  %v160_v52 = vrot.slane %v1094_v34, %v1047_v12  ;;  %v164_v53 = vrot.slane %v1094_v34, %v1050_v13  ;;  %v168_v54 = vrot.slane %v1094_v34, %v1056_v15 }
  0x10   :  { %v1126_v55 = vmul.f32 %v292_v38, %v291_v37  ;;  %v172_v56 = vrot.slane %v1094_v34, %v1059_v16  ;;  %v176_v57 = vrot.slane %v1094_v34, %v1062_v17  ;;  %v180_v58 = vrot.slane %v1094_v34, %v1065_v18 }
  0x11   :  { %878 = vset.pattern.permute.xlu1 %v991_v1  ;;  %v184_v59 = vrot.slane %v1094_v34, %v1068_v19  ;;  %v188_v63 = vrot.slane %v1094_v34, %v1071_v20 }
  0x74   :  { %v283_v5 = vpop.permute.xlu0 %282 }
  0x75   :  { %v285_v6 = vsub.f32 %v21_v0, %v283_v5 }
  0x77   :  { %287 = vrot.lane.b32.xlu0 %v285_v6, %s995_s24 }
  0x7b   :  { %153 = vperm.xlu0 %876, %v21_v0  }
  0x7f   :  { %879 = vset.pattern.permute.xlu0 %v1431_v3 }
  0x80   :  { %449 = vperm.xlu0 %879, %v447_v7  }
  0x82   :  { %v32_v21 = vpop.permute.xlu1 %31 }
  0x83   :  { %v75_v60 = vmin.f32 %v32_v21, %v38_v23  ;;  %v76_v61 = vmin.f32 %v32_v21, %v42_v24  ;;  %v77_v62 = vmin.f32 %v32_v21, %v46_v25  ;;  %v78_v0 = vmin.f32 %v32_v21, %v50_v26 }
  0x84   :  { %v79_v1 = vmin.f32 %v32_v21, %v54_v27  ;;  %v80_v2 = vmin.f32 %v32_v21, %v58_v28  ;;  %v1138_v4 = vmin.f32 %v32_v21, %v62_v29  ;;  %v1140_v5 = vmin.f32 %v32_v21, %v66_v30 }
  0x87   :  { %v85_v43 = vpop.permute.xlu1 %84 }
  0x88   :  { %v128_v10 = vmax.f32 %v85_v43, %v91_v31  ;;  %v129_v14 = vmax.f32 %v85_v43, %v95_v32  ;;  %v130_v22 = vmax.f32 %v85_v43, %v99_v35  ;;  %v131_v25 = vmax.f32 %v85_v43, %v103_v36 }
  0x89   :  { %v132_v21 = vmax.f32 %v85_v43, %v107_v39  ;;  %v133_v26 = vmax.f32 %v85_v43, %v111_v40  ;;  %v134_v28 = vmax.f32 %v85_v43, %v115_v41  ;;  %v135_v29 = vmax.f32 %v85_v43, %v119_v42 }
  0x8a   :  { %v136_v32 = vsub.f32 %v75_v60, %v128_v10  ;;  %v137_v35 = vsub.f32 %v76_v61, %v129_v14  ;;  %v138_v3 = vsub.f32 %v77_v62, %v130_v22 }
  0xe9   :  { %v288_v8 = vpop.permute.xlu0 %287 }
  0xea   :  { %v290_v9 = vmul.f32 %v288_v8, %v285_v6  ;;  %v207_v6 = vpop.permute.xlu1 %206 }
  0xeb   :  { %v250_v30 = vmax.f32 %v207_v6, %v213_v44  ;;  %v251_v33 = vmax.f32 %v207_v6, %v217_v45  ;;  %v252_v34 = vmax.f32 %v207_v6, %v221_v46  ;;  %v254_v8 = vmax.f32 %v207_v6, %v229_v48 }
  0xec   :  { %296 = vperm.xlu1 %878, %v290_v9   ;;  %v253_v9 = vmax.f32 %v207_v6, %v225_v47  ;;  %v255_v24 = vmax.f32 %v207_v6, %v233_v49  ;;  %v256_v40 = vmax.f32 %v207_v6, %v237_v50  ;;  %v257_v7 = vmax.f32 %v207_v6, %v241_v51 }
  0xed   :  { %v139_v45 = vsub.f32 %v78_v0, %v131_v25  ;;  %v140_v46 = vsub.f32 %v79_v1, %v132_v21  ;;  %v144_v47 = vmax.f32 %v136_v32, 0.0  ;;  %v327_v0 = vrot.slane %v1126_v55, %v1068_v19 }
  0xee   :  { %v331_v1 = vrot.slane %v1126_v55, %v1071_v20  ;;  %v1437_v20 = vrot.slane %v1126_v55, %v1050_v13  ;;  %v1438_v25 = vrot.slane %v1126_v55, %v1056_v15 }
  0xef   :  { %v147_v62 = vmax.f32 %v139_v45, 0.0 }
  0xfa   :  { %v154_v23 = vpop.permute.xlu0 %153 }
  0xfb   :  { %v197_v37 = vmin.f32 %v154_v23, %v160_v52  ;;  %v198_v38 = vmin.f32 %v154_v23, %v164_v53  ;;  %v199_v31 = vmin.f32 %v154_v23, %v168_v54  ;;  %v200_v36 = vmin.f32 %v154_v23, %v172_v56 }
  0xfc   :  { %v201_v39 = vmin.f32 %v154_v23, %v176_v57  ;;  %v202_v11 = vmin.f32 %v154_v23, %v180_v58  ;;  %v203_v27 = vmin.f32 %v154_v23, %v184_v59  ;;  %v204_v41 = vmin.f32 %v154_v23, %v188_v63 }
  0xfd   :  { %v258_v42 = vsub.f32 %v197_v37, %v250_v30  ;;  %v259_v43 = vsub.f32 %v198_v38, %v251_v33  ;;  %v260_v44 = vsub.f32 %v199_v31, %v252_v34  ;;  %v141_v52 = vsub.f32 %v80_v2, %v133_v26 }
  0xfe   :  { %v142_v53 = vsub.f32 %v1138_v4, %v134_v28  ;;  %v143_v54 = vsub.f32 %v1140_v5, %v135_v29  ;;  %v261_v48 = vsub.f32 %v200_v36, %v253_v9  ;;  %v262_v49 = vsub.f32 %v201_v39, %v254_v8 }
  0xff   :  { %v145_v56 = vmax.f32 %v137_v35, 0.0  ;;  %v146_v57 = vmax.f32 %v138_v3, 0.0  ;;  %v263_v50 = vsub.f32 %v202_v11, %v255_v24  ;;  %v264_v51 = vsub.f32 %v203_v27, %v256_v40 }
 0x100   :  { %v265_v58 = vsub.f32 %v204_v41, %v257_v7  ;;  %v266_v59 = vmax.f32 %v258_v42, 0.0  ;;  %v267_v60 = vmax.f32 %v259_v43, 0.0  ;;  %v268_v61 = vmax.f32 %v260_v44, 0.0  ;;  %v450_v42 = vpop.permute.xlu0 %449 }
 0x101   :  { %v323_v63 = vrot.slane %v1126_v55, %v1065_v18  ;;  %v148_v2 = vmax.f32 %v140_v46, 0.0  ;;  %v149_v4 = vmax.f32 %v141_v52, 0.0  ;;  %v269_v5 = vmax.f32 %v261_v48, 0.0 }
 0x102   :  { %v270_v3 = vmax.f32 %v262_v49, 0.0  ;;  %v150_v11 = vmax.f32 %v142_v53, 0.0  ;;  %v151_v6 = vmax.f32 %v143_v54, 0.0  ;;  %v271_v7 = vmax.f32 %v263_v50, 0.0 }
 0x103   :  { %v272_v8 = vmax.f32 %v264_v51, 0.0  ;;  %v273_v9 = vmax.f32 %v265_v58, 0.0  ;;  %v274_v14 = vmul.f32 %v266_v59, %v144_v47  ;;  %v275_v22 = vmul.f32 %v267_v60, %v145_v56 }
 0x104   :  { %v276_v23 = vmul.f32 %v268_v61, %v146_v57  ;;  %v1436_v18 = vrot.slane %v1126_v55, %v1047_v12  ;;  %v1439_v26 = vrot.slane %v1126_v55, %v1059_v16  ;;  %v277_v28 = vmul.f32 %v269_v5, %v147_v62 }
 0x105   :  { %v1172_v29 = vmul.f32 %v270_v3, %v148_v2  ;;  %v1440_v30 = vrot.slane %v1126_v55, %v1062_v17  ;;  %v279_v31 = vmul.f32 %v271_v7, %v149_v4  ;;  %v280_v35 = vmul.f32 %v272_v8, %v150_v11  ;;  %v1441_v17 = vld [vmem:[#allocation12_spill] sm:$0xff] }
 0x106   :  { %v281_v16 = vmul.f32 %v273_v9, %v151_v6  ;;  %v446_v55 = vmul.u32 32, %v1441_v17  ;;  %v996_v43 = vmov 1966171168   ;;  %vm356_vm0 = vcmp.gt.f32.partialorder %v274_v14, 0.0 }
 0x107   :  { %v593_v44 = vunpack.c.l.s4 %v996_v43  ;;  %vm357_vm1 = vcmp.gt.f32.partialorder %v275_v22, 0.0  ;;  %vm358_vm2 = vcmp.gt.f32.partialorder %v276_v23, 0.0  ;;  %vm359_vm3 = vcmp.gt.f32.partialorder %v277_v28, 0.0 }
 0x108   :  { %v1179_v46 = vadd.s32 %v450_v42, %v446_v55  ;;  %vm360_vm4 = vcmp.gt.f32.partialorder %v1172_v29, 0.0  ;;  %vm361_vm5 = vcmp.gt.f32.partialorder %v279_v31, 0.0  ;;  %vm362_vm6 = vcmp.gt.f32.partialorder %v280_v35, 0.0 }
 0x109   :  { %v594_v54 = vunpack.c.0.s8 %v593_v44  ;;  %vm363_vm7 = vcmp.gt.f32.partialorder %v281_v16, 0.0 }
 0x16b   :  { %v297_v10 = vpop.permute.xlu1 %296 }
 0x16c   :  { %v340_v19 = vadd.f32 %v1436_v18, %v297_v10  ;;  %v341_v24 = vadd.f32 %v1437_v20, %v297_v10  ;;  %v342_v21 = vadd.f32 %v1438_v25, %v297_v10  ;;  %v343_v27 = vadd.f32 %v1439_v26, %v297_v10 }
 0x16d   :  { %v344_v12 = vadd.f32 %v1440_v30, %v297_v10  ;;  %v345_v33 = vadd.f32 %v323_v63, %v297_v10  ;;  %v346_v34 = vadd.f32 %v327_v0, %v297_v10  ;;  %v347_v32 = vadd.f32 %v331_v1, %v297_v10 }
 0x16e   :  { %v348_v37 = vsub.f32 %v340_v19, %v274_v14  ;;  %v349_v13 = vsub.f32 %v341_v24, %v275_v22  ;;  %v350_v38 = vsub.f32 %v342_v21, %v276_v23  ;;  %v351_v15 = vsub.f32 %v343_v27, %v277_v28 }
 0x16f   :  { %v352_v36 = vsub.f32 %v344_v12, %v1172_v29  ;;  %v353_v39 = vsub.f32 %v345_v33, %v279_v31  ;;  %v354_v40 = vsub.f32 %v346_v34, %v280_v35  ;;  %v355_v41 = vsub.f32 %v347_v32, %v281_v16 }
 0x170   :  { %880 = vrcp.f32 %v348_v37  ;;  %v1194_v0 = vsub.s32 %v594_v54, %v1441_v17 }
 0x171   :  { %882 = vrcp.f32 %v349_v13 }
 0x172   :  { %884 = vrcp.f32 %v350_v38 }
 0x173   :  { %886 = vrcp.f32 %v351_v15 }
 0x174   :  { %888 = vrcp.f32 %v352_v36 }
 0x175   :  { %890 = vrcp.f32 %v353_v39 }
 0x176   :  { %892 = vrcp.f32 %v354_v40 }
 0x177   :  { %894 = vrcp.f32 %v355_v41 }
 0x17a   :  { %v881_v45 = vpop.eup %880 }
 0x17b   :  { %v883_v52 = vpop.eup %882  ;;  %v365_v53 = vmul.f32 %v881_v45, %v274_v14 }
 0x17c   :  { %v885_v47 = vpop.eup %884  ;;  %v367_v48 = vmul.f32 %v883_v52, %v275_v22 }
 0x17d   :  { %v887_v49 = vpop.eup %886  ;;  %v369_v56 = vmul.f32 %v885_v47, %v276_v23  ;;  %v1182_v57 = vsel %vm356_vm0, %v365_v53, 0.0 }
 0x17e   :  { %v889_v50 = vpop.eup %888  ;;  %v371_v51 = vmul.f32 %v887_v49, %v277_v28  ;;  %v1185_v58 = vsel %vm357_vm1, %v367_v48, 0.0  ;;  %v388_v59 = vrot.slane %v1182_v57, 4 }
 0x17f   :  { %v891_v60 = vpop.eup %890  ;;  %v373_v61 = vmul.f32 %v889_v50, %v1172_v29  ;;  %v1190_v62 = vsel %vm358_vm2, %v369_v56, 0.0  ;;  %v394_v63 = vrot.slane %v1185_v58, 4 }
 0x180   :  { %v893_v1 = vpop.eup %892  ;;  %v375_v2 = vmul.f32 %v891_v60, %v279_v31  ;;  %v383_v4 = vsel %vm359_vm3, %v371_v51, 0.0  ;;  %v389_v5 = vmax.f32 %v1182_v57, %v388_v59  ;;  %v400_v3 = vrot.slane %v1190_v62, 4 }
 0x181   :  { %v895_v11 = vpop.eup %894  ;;  %v377_v6 = vmul.f32 %v893_v1, %v280_v35  ;;  %v384_v7 = vsel %vm360_vm4, %v373_v61, 0.0  ;;  %v395_v8 = vmax.f32 %v1185_v58, %v394_v63  ;;  %v406_v9 = vrot.slane %v383_v4, 4 }
 0x182   :  { %v379_v10 = vmul.f32 %v895_v11, %v281_v16  ;;  %v385_v14 = vsel %vm361_vm5, %v375_v2, 0.0  ;;  %v390_v22 = vrot.slane %v389_v5, 2  ;;  %v401_v23 = vmax.f32 %v1190_v62, %v400_v3 }
 0x183   :  { %v386_v18 = vsel %vm362_vm6, %v377_v6, 0.0  ;;  %v396_v19 = vrot.slane %v395_v8, 2  ;;  %v407_v20 = vmax.f32 %v383_v4, %v406_v9  ;;  %v412_v24 = vrot.slane %v384_v7, 4 }
 0x184   :  { %v387_v25 = vsel %vm363_vm7, %v379_v10, 0.0  ;;  %v391_v21 = vmax.f32 %v389_v5, %v390_v22  ;;  %v402_v26 = vrot.slane %v401_v23, 2  ;;  %v418_v27 = vrot.slane %v385_v14, 4 }
 0x185   :  { %v397_v28 = vmax.f32 %v395_v8, %v396_v19  ;;  %v408_v29 = vrot.slane %v407_v20, 2  ;;  %v413_v30 = vmax.f32 %v384_v7, %v412_v24  ;;  %v424_v12 = vrot.slane %v386_v18, 4 }
 0x186   :  { %v392_v33 = vrot.slane %v391_v21, 1  ;;  %v403_v34 = vmax.f32 %v401_v23, %v402_v26  ;;  %v419_v37 = vmax.f32 %v385_v14, %v418_v27  ;;  %v430_v13 = vrot.slane %v387_v25, 4 }
 0x187   :  { %v398_v38 = vrot.slane %v397_v28, 1  ;;  %v409_v31 = vmax.f32 %v407_v20, %v408_v29  ;;  %v414_v32 = vrot.slane %v413_v30, 2  ;;  %v425_v15 = vmax.f32 %v386_v18, %v424_v12 }
 0x188   :  { %v1206_v35 = vmax.f32 %v391_v21, %v392_v33  ;;  %v404_v36 = vrot.slane %v403_v34, 1  ;;  %v420_v16 = vrot.slane %v419_v37, 2  ;;  %v431_v39 = vmax.f32 %v387_v25, %v430_v13 }
 0x189   :  { %v1208_v40 = vmax.f32 %v397_v28, %v398_v38  ;;  %v410_v41 = vrot.slane %v409_v31, 1  ;;  %v415_v17 = vmax.f32 %v413_v30, %v414_v32  ;;  %v426_v55 = vrot.slane %v425_v15, 2 }
 0x18a   :  { %v1210_v42 = vmax.f32 %v403_v34, %v404_v36  ;;  %v421_v43 = vmax.f32 %v419_v37, %v420_v16  ;;  %v432_v44 = vrot.slane %v431_v39, 2  ;;  %vm436_vm8 = vcmp.eq.f32.partialorder %v1182_v57, %v1206_v35 }
 0x18b   :  { %v1214_v45 = vmax.f32 %v409_v31, %v410_v41  ;;  %v416_v52 = vrot.slane %v415_v17, 1  ;;  %v427_v53 = vmax.f32 %v425_v15, %v426_v55  ;;  %vm437_vm9 = vcmp.eq.f32.partialorder %v1185_v58, %v1208_v40 }
 0x18c   :  { %v422_v54 = vrot.slane %v421_v43, 1  ;;  %v433_v47 = vmax.f32 %v431_v39, %v432_v44  ;;  %vm438_vm10 = vcmp.eq.f32.partialorder %v1190_v62, %v1210_v42  ;;  %v452_v48 = vsel %vm436_vm8, %v1179_v46, 1073741824 }
 0x18d   :  { %v1221_v49 = vmax.f32 %v415_v17, %v416_v52  ;;  %v428_v56 = vrot.slane %v427_v53, 1  ;;  %vm439_vm11 = vcmp.eq.f32.partialorder %v383_v4, %v1214_v45  ;;  %v453_v57 = vsel %vm437_vm9, %v1179_v46, 1073741824 }
 0x18e   :  { %v1225_v50 = vmax.f32 %v421_v43, %v422_v54  ;;  %v434_v51 = vrot.slane %v433_v47, 1  ;;  %v454_v59 = vsel %vm438_vm10, %v1179_v46, 1073741824  ;;  %v455_v58 = vsel %vm439_vm11, %v1179_v46, 1073741824 }
 0x18f   :  { %v1229_v60 = vmax.f32 %v427_v53, %v428_v56  ;;  %vm440_vm12 = vcmp.eq.f32.partialorder %v384_v7, %v1221_v49  ;;  %v460_v61 = vrot.slane %v452_v48, 4  ;;  %v469_v62 = vrot.slane %v453_v57, 4 }
 0x190   :  { %v1232_v63 = vmax.f32 %v433_v47, %v434_v51  ;;  %vm441_vm13 = vcmp.eq.f32.partialorder %v385_v14, %v1225_v50  ;;  %v456_v1 = vsel %vm440_vm12, %v1179_v46, 1073741824  ;;  %v478_v2 = vrot.slane %v454_v59, 4 }
 0x191   :  { %vm442_vm14 = vcmp.eq.f32.partialorder %v386_v18, %v1229_v60  ;;  %v457_v4 = vsel %vm441_vm13, %v1179_v46, 1073741824  ;;  %vm461_vm15 = vcmp.lt.s32.totalorder %v452_v48, %v460_v61  ;;  %vm470_vm0 = vcmp.lt.s32.totalorder %v453_v57, %v469_v62 }
 0x192   :  { %vm443_vm1 = vcmp.eq.f32.partialorder %v387_v25, %v1232_v63  ;;  %v458_v5 = vsel %vm442_vm14, %v1179_v46, 1073741824  ;;  %v462_v3 = vsel %vm461_vm15, %v452_v48, %v460_v61  ;;  %v471_v11 = vsel %vm470_vm0, %v453_v57, %v469_v62 }
 0x193   :  { %v459_v6 = vsel %vm443_vm1, %v1179_v46, 1073741824  ;;  %v463_v7 = vrot.slane %v462_v3, 2  ;;  %v472_v8 = vrot.slane %v471_v11, 2  ;;  %vm479_vm2 = vcmp.lt.s32.totalorder %v454_v59, %v478_v2 }
 0x194   :  { %v480_v9 = vsel %vm479_vm2, %v454_v59, %v478_v2  ;;  %v487_v10 = vrot.slane %v455_v58, 4  ;;  %v496_v14 = vrot.slane %v456_v1, 4  ;;  %v505_v22 = vrot.slane %v457_v4, 4 }
 0x195   :  { %vm464_vm3 = vcmp.lt.s32.totalorder %v462_v3, %v463_v7  ;;  %vm473_vm4 = vcmp.lt.s32.totalorder %v471_v11, %v472_v8  ;;  %v481_v23 = vrot.slane %v480_v9, 2  ;;  %v514_v18 = vrot.slane %v458_v5, 4 }
 0x196   :  { %v465_v19 = vsel %vm464_vm3, %v462_v3, %v463_v7  ;;  %v474_v20 = vsel %vm473_vm4, %v471_v11, %v472_v8  ;;  %vm488_vm5 = vcmp.lt.s32.totalorder %v455_v58, %v487_v10  ;;  %vm497_vm6 = vcmp.lt.s32.totalorder %v456_v1, %v496_v14 }
 0x197   :  { %v466_v24 = vrot.slane %v465_v19, 1  ;;  %v475_v25 = vrot.slane %v474_v20, 1  ;;  %vm482_vm7 = vcmp.lt.s32.totalorder %v480_v9, %v481_v23  ;;  %v489_v21 = vsel %vm488_vm5, %v455_v58, %v487_v10 }
 0x198   :  { %v483_v46 = vsel %vm482_vm7, %v480_v9, %v481_v23  ;;  %v490_v26 = vrot.slane %v489_v21, 2  ;;  %v498_v27 = vsel %vm497_vm6, %v456_v1, %v496_v14  ;;  %vm506_vm8 = vcmp.lt.s32.totalorder %v457_v4, %v505_v22 }
 0x199   :  { %vm467_vm9 = vcmp.lt.s32.totalorder %v465_v19, %v466_v24  ;;  %vm476_vm10 = vcmp.lt.s32.totalorder %v474_v20, %v475_v25  ;;  %v484_v28 = vrot.slane %v483_v46, 1  ;;  %v499_v29 = vrot.slane %v498_v27, 2 }
 0x19a   :  { %v1241_v30 = vsel %vm467_vm9, %v465_v19, %v466_v24  ;;  %v1243_v12 = vsel %vm476_vm10, %v474_v20, %v475_v25  ;;  %vm491_vm11 = vcmp.lt.s32.totalorder %v489_v21, %v490_v26  ;;  %v507_v33 = vsel %vm506_vm8, %v457_v4, %v505_v22 }
 0x19b   :  { %vm485_vm12 = vcmp.lt.s32.totalorder %v483_v46, %v484_v28  ;;  %v492_v34 = vsel %vm491_vm11, %v489_v21, %v490_v26  ;;  %vm500_vm13 = vcmp.lt.s32.totalorder %v498_v27, %v499_v29  ;;  %v508_v37 = vrot.slane %v507_v33, 2 }
 0x19c   :  { %v1245_v13 = vsel %vm485_vm12, %v483_v46, %v484_v28  ;;  %v493_v38 = vrot.slane %v492_v34, 1  ;;  %v501_v31 = vsel %vm500_vm13, %v498_v27, %v499_v29  ;;  %vm515_vm14 = vcmp.lt.s32.totalorder %v458_v5, %v514_v18 }
 0x19d   :  { %v502_v32 = vrot.slane %v501_v31, 1  ;;  %vm509_vm15 = vcmp.lt.s32.totalorder %v507_v33, %v508_v37  ;;  %v516_v15 = vsel %vm515_vm14, %v458_v5, %v514_v18  ;;  %v523_v36 = vrot.slane %v459_v6, 4 }
 0x19e   :  { %vm494_vm0 = vcmp.lt.s32.totalorder %v492_v34, %v493_v38  ;;  %v510_v16 = vsel %vm509_vm15, %v507_v33, %v508_v37  ;;  %v517_v39 = vrot.slane %v516_v15, 2  ;;  %v532_v41 = vshra.s32 %v1241_v30, 5 }
 0x19f   :  { %v1248_v17 = vsel %vm494_vm0, %v492_v34, %v493_v38  ;;  %vm503_vm1 = vcmp.lt.s32.totalorder %v501_v31, %v502_v32  ;;  %v511_v55 = vrot.slane %v510_v16, 1  ;;  %vm524_vm2 = vcmp.lt.s32.totalorder %v459_v6, %v523_v36 }
 0x1a0   :  { %v1250_v43 = vsel %vm503_vm1, %v501_v31, %v502_v32  ;;  %vm518_vm3 = vcmp.lt.s32.totalorder %v516_v15, %v517_v39  ;;  %v525_v44 = vsel %vm524_vm2, %v459_v6, %v523_v36  ;;  %v533_v52 = vshra.s32 %v1243_v12, 5 }
 0x1a1   :  { %vm512_vm4 = vcmp.lt.s32.totalorder %v510_v16, %v511_v55  ;;  %v519_v53 = vsel %vm518_vm3, %v516_v15, %v517_v39  ;;  %v526_v54 = vrot.slane %v525_v44, 2  ;;  %v534_v47 = vshra.s32 %v1245_v13, 5 }
 0x1a2   :  { %v1254_v48 = vsel %vm512_vm4, %v510_v16, %v511_v55  ;;  %v520_v56 = vrot.slane %v519_v53, 1  ;;  %v535_v57 = vshra.s32 %v1248_v17, 5  ;;  %v536_v51 = vshra.s32 %v1250_v43, 5 }
 0x1a3   :  { %vm527_vm5 = vcmp.lt.s32.totalorder %v525_v44, %v526_v54  ;;  %v537_v59 = vshra.s32 %v1254_v48, 5  ;;  %v540_v58 = vand.u32 31, %v1241_v30  ;;  %v541_v61 = vand.u32 31, %v1243_v12 }
 0x1a4   :  { %vm521_vm6 = vcmp.lt.s32.totalorder %v519_v53, %v520_v56  ;;  %v528_v62 = vsel %vm527_vm5, %v525_v44, %v526_v54  ;;  %v542_v1 = vand.u32 31, %v1245_v13  ;;  %v543_v2 = vand.u32 31, %v1248_v17 }
 0x1a5   :  { %v1263_v4 = vsel %vm521_vm6, %v519_v53, %v520_v56  ;;  %v529_v5 = vrot.slane %v528_v62, 1  ;;  %v544_v3 = vand.u32 31, %v1250_v43  ;;  %v545_v11 = vand.u32 31, %v1254_v48 }
 0x1a6   :  { %v538_v6 = vshra.s32 %v1263_v4, 5  ;;  %v546_v7 = vand.u32 31, %v1263_v4  ;;  %v639_v8 = vcombine.low %v532_v41, %v533_v52  ;;  %v640_v9 = vcombine.low %v534_v47, %v535_v57 }
 0x1a7   :  { %vm530_vm7 = vcmp.lt.s32.totalorder %v528_v62, %v529_v5  ;;  %v641_v10 = vcombine.low %v536_v51, %v537_v59  ;;  %v588_v14 = vcombine.low %v1206_v35, %v1208_v40  ;;  %v589_v22 = vcombine.low %v1210_v42, %v1214_v45 }
 0x1a8   :  { %v1273_v23 = vsel %vm530_vm7, %v528_v62, %v529_v5  ;;  %v649_v18 = vrot.slane %v639_v8, %v1194_v0  ;;  %v656_v19 = vrot.slane %v640_v9, %v1194_v0  ;;  %v590_v20 = vcombine.low %v1221_v49, %v1225_v50 }
 0x1a9   :  { %v539_v24 = vshra.s32 %v1273_v23, 5  ;;  %v547_v25 = vand.u32 31, %v1273_v23  ;;  %v663_v21 = vrot.slane %v641_v10, %v1194_v0  ;;  %v591_v46 = vcombine.low %v1229_v60, %v1232_v63 }
 0x1aa   :  { %v671_v26 = vcombine.low %v649_v18, %v656_v19  ;;  %v598_v27 = vrot.slane %v588_v14, %v1194_v0  ;;  %v605_v28 = vrot.slane %v589_v22, %v1194_v0  ;;  %v612_v29 = vrot.slane %v590_v20, %v1194_v0 }
 0x1ab   :  { %v642_v33 = vcombine.low %v538_v6, %v539_v24  ;;  %v619_v34 = vrot.slane %v591_v46, %v1194_v0  ;;  %vm548_vm8 = vcmp.ge.f32.partialorder %v1206_v35, 0.5  ;;  %vm549_vm9 = vcmp.ge.f32.partialorder %v1208_v40, 0.5 }
 0x1ac   :  { %v679_v37 = vrot.slane %v671_v26, %v1194_v0  ;;  %v620_v38 = vcombine.low %v598_v27, %v605_v28  ;;  %vm550_vm10 = vcmp.ge.f32.partialorder %v1210_v42, 0.5  ;;  %vm551_vm11 = vcmp.ge.f32.partialorder %v1214_v45, 0.5 }
 0x1ad   :  { %v670_v31 = vrot.slane %v642_v33, %v1194_v0  ;;  %v621_v32 = vcombine.low %v612_v29, %v619_v34  ;;  %vm552_vm12 = vcmp.ge.f32.partialorder %v1221_v49, 0.5  ;;  %vm553_vm13 = vcmp.ge.f32.partialorder %v1225_v50, 0.5 }
 0x1ae   :  { %v628_v15 = vrot.slane %v620_v38, %v1194_v0  ;;  %vm554_vm14 = vcmp.ge.f32.partialorder %v1229_v60, 0.5  ;;  %vm555_vm15 = vcmp.ge.f32.partialorder %v1232_v63, 0.5  ;;  %v1442_v36 = vmov 0  }
 0x1af   :  { %v556_v16 = vsel %vm548_vm8, 1, %v1442_v36  ;;  %v672_v39 = vcombine.low %v663_v21, %v670_v31  ;;  %v635_v41 = vrot.slane %v621_v32, %v1194_v0  ;;  %v557_v55 = vsel %vm549_vm9, 1, %v1442_v36 }
 0x1b0   :  { %v558_v44 = vsel %vm550_vm10, 1, %v1442_v36  ;;  %v559_v52 = vsel %vm551_vm11, 1, %v1442_v36  ;;  %v560_v53 = vsel %vm552_vm12, 1, %v1442_v36  ;;  %v561_v54 = vsel %vm553_vm13, 1, %v1442_v36 }
 0x1b1   :  { %v562_v47 = vsel %vm554_vm14, 1, %v1442_v36  ;;  %v686_v56 = vrot.slane %v672_v39, %v1194_v0  ;;  %v636_v57 = vcombine.low %v628_v15, %v635_v41  ;;  %v563_v51 = vsel %vm555_vm15, 1, %v1442_v36 }
 0x1b2   :  { %v689_v59 = vcombine.low %v556_v16, %v557_v55  ;;  %v690_v62 = vcombine.low %v558_v44, %v559_v52  ;;  %v691_v5 = vcombine.low %v560_v53, %v561_v54  ;;  %v692_v6 = vcombine.low %v562_v47, %v563_v51 }
 0x1b3   :  { %v855_v8 = vsel %vm548_vm8, %v540_v58, 20  ;;  %v687_v9 = vcombine.low %v679_v37, %v686_v56  ;;  %638 = vst [vmem:[#allocation2] sm:$0xff] %v636_v57  ;;  %v856_v14 = vsel %vm549_vm9, %v541_v61, 20  ;;  %v857_v22 = vsel %vm550_vm10, %v542_v1, 20 }
 0x1b4   :  { %v699_v10 = vrot.slane %v689_v59, %v1194_v0 }
 0x1b5   :  { %907 = shalt.err (!%p904_p4)
}
 0x1b6   :  { %s908_s15 = scalar_lea.hbm %s1427_s3, 128 }
 0x1b7   :  { %p909_p5 = scmp.ne.s32.totalorder %s1427_s3, %s908_s15  ;;  %p912_p6 = scmp.lt.u32.totalorder %s908_s15, %s1427_s3 }
 0x1b9   :  { %p914_p7 = pnand %p912_p6, %p909_p5 }
 0x1bb   :  { %917 = shalt.err (!%p914_p7)
}
 0x1bc   :  { %798 = dma.vmem_to_hbm [thread:$0]  %s796_s9, 128, %s1427_s3, [#allocation3]   ;;  %v706_v35 = vrot.slane %v690_v62, %v1194_v0  ;;  %v713_v40 = vrot.slane %v691_v5, %v1194_v0  ;;  %v720_v42 = vrot.slane %v692_v6, %v1194_v0  ;;  %v858_v30 = vsel %vm551_vm11, %v543_v2, 20  ;;  %688 = vst [vmem:[#allocation4] sm:$0xff] %v687_v9 }
 0x1bd   :  { %v859_v12 = vsel %vm552_vm12, %v544_v3, 20  ;;  %v860_v13 = vsel %vm553_vm13, %v545_v11, 20  ;;  %v861_v58 = vsel %vm554_vm14, %v546_v7, 20  ;;  %v862_v45 = vsel %vm555_vm15, %v547_v25, 20  ;;  %s918_s3 = scalar_lea.vmem %s1329_s11, 128  ;;  %p923_p9 = scmp.lt.s32.totalorder %s1329_s11, %s1329_s11 }
 0x1be   :  { %p919_p8 = scmp.ne.s32.totalorder %s1329_s11, %s918_s3  ;;  %p924_p10 = scmp.lt.s32.totalorder %s918_s3, %s918_s3 }
 0x1c0   :  { %p925_p11 = por %p924_p10, %p923_p9 }
 0x1c2   :  { %p926_p12 = pnand %p925_p11, %p919_p8 }
 0x1c4   :  { %929 = shalt.err (!%p926_p12)
}
 0x1c5   :  { %s930_s24 = scalar_lea.hbm %s1428_s4, 128 }
 0x1c6   :  { %p931_p13 = scmp.ne.s32.totalorder %s1428_s4, %s930_s24  ;;  %p934_p0 = scmp.lt.u32.totalorder %s930_s24, %s1428_s4 }
 0x1c8   :  { %p936_p1 = pnand %p934_p0, %p931_p13 }
 0x1ca   :  { %939 = shalt.err (!%p936_p1)
}
 0x1cb   :  { %808 = dma.vmem_to_hbm [thread:$0]  %s1329_s11, 128, %s1428_s4, [#allocation5]   ;;  %v721_v49 = vcombine.low %v699_v10, %v706_v35  ;;  %v722_v50 = vcombine.low %v713_v40, %v720_v42  ;;  %v739_v60 = vcombine.low %v855_v8, %v856_v14  ;;  %v740_v63 = vcombine.low %v857_v22, %v858_v30 }
 0x1cc   :  { %s999_s29 = smov [#allocation6]   ;;  %v741_v17 = vcombine.low %v859_v12, %v860_v13  ;;  %v742_v43 = vcombine.low %v861_v58, %v862_v45  ;;  %s1000_s4 = smov [#allocation7]  }
 0x1cd   :  { %s815_s30 = sshll.u32 %s999_s29, 4  ;;  %v729_v48 = vrot.slane %v721_v49, %v1194_v0  ;;  %v736_v61 = vrot.slane %v722_v50, %v1194_v0  ;;  %v749_v1 = vrot.slane %v739_v60, %v1194_v0  ;;  %v756_v2 = vrot.slane %v740_v63, %v1194_v0  ;;  %s825_s7 = sshll.u32 %s1000_s4, 4  ;;  %s816_s30 = int_to_ptr.vmem [resolvable:$true] %s815_s30  ;;  %s826_s7 = int_to_ptr.vmem [resolvable:$true] %s825_s7 }
 0x1ce   :  { %v763_v4 = vrot.slane %v741_v17, %v1194_v0  ;;  %v770_v3 = vrot.slane %v742_v43, %v1194_v0  ;;  %s940_s8 = scalar_lea.vmem %s816_s30, 128  ;;  %p945_p3 = scmp.lt.s32.totalorder %s816_s30, %s816_s30 }
 0x1cf   :  { %v737_v11 = vcombine.low %v729_v48, %v736_v61  ;;  %v771_v7 = vcombine.low %v749_v1, %v756_v2  ;;  %p941_p2 = scmp.ne.s32.totalorder %s816_s30, %s940_s8  ;;  %p946_p4 = scmp.lt.s32.totalorder %s940_s8, %s940_s8 }
 0x1d0   :  { %v772_v23 = vcombine.low %v763_v4, %v770_v3 }
 0x1d1   :  { %738 = vst [vmem:[#allocation6] sm:$0xff] %v737_v11  ;;  %v779_v18 = vrot.slane %v771_v7, %v1194_v0  ;;  %p947_p5 = por %p946_p4, %p945_p3 }
 0x1d3   :  { %p948_p6 = pnand %p947_p5, %p941_p2 }
 0x1d5   :  { %951 = shalt.err (!%p948_p6)
}
 0x1d6   :  { %s952_s10 = scalar_lea.hbm %s1429_s5, 128 }
 0x1d7   :  { %p953_p7 = scmp.ne.s32.totalorder %s1429_s5, %s952_s10  ;;  %p956_p8 = scmp.lt.u32.totalorder %s952_s10, %s1429_s5 }
 0x1d9   :  { %p958_p9 = pnand %p956_p8, %p953_p7 }
 0x1db   :  { %961 = shalt.err (!%p958_p9)
}
 0x1dc   :  { %818 = dma.vmem_to_hbm [thread:$0]  %s816_s30, 128, %s1429_s5, [#allocation5]   ;;  %v786_v19 = vrot.slane %v772_v23, %v1194_v0 }
 0x1dd   :  { %s962_s17 = scalar_lea.vmem %s826_s7, 128  ;;  %p967_p11 = scmp.lt.s32.totalorder %s826_s7, %s826_s7 }
 0x1de   :  { %v787_v20 = vcombine.low %v779_v18, %v786_v19  ;;  %p963_p10 = scmp.ne.s32.totalorder %s826_s7, %s962_s17  ;;  %p968_p12 = scmp.lt.s32.totalorder %s962_s17, %s962_s17 }
 0x1e0   :  { %788 = vst [vmem:[#allocation7] sm:$0xff] %v787_v20  ;;  %p969_p13 = por %p968_p12, %p967_p11 }
 0x1e2   :  { %p970_p0 = pnand %p969_p13, %p963_p10 }
 0x1e4   :  { %973 = shalt.err (!%p970_p0)
}
 0x1e5   :  { %s974_s20 = scalar_lea.hbm %s1430_s6, 128 }
 0x1e6   :  { %p975_p1 = scmp.ne.s32.totalorder %s1430_s6, %s974_s20  ;;  %p978_p2 = scmp.lt.u32.totalorder %s974_s20, %s1430_s6 }
 0x1e8   :  { %p980_p3 = pnand %p978_p2, %p975_p1 }
 0x1ea   :  { %983 = shalt.err (!%p980_p3)
}
 0x1eb   :  { %828 = dma.vmem_to_hbm [thread:$0]  %s826_s7, 128, %s1430_s6, [#allocation8]  }
 0x1ec   :  { %984 = dma.done.wait [#allocation3], 128  }
 0x1ed   :  { %985 = vsyncadd [#allocation3], 4294967168 }
 0x1ee   :  { %986 = dma.done.wait [#allocation5], 256  }
 0x1ef   :  { %987 = vsyncadd [#allocation5], 4294967040 }
 0x1f0   :  { %988 = dma.done.wait [#allocation8], 128  }
 0x1f1   :  { %989 = vsyncadd [#allocation8], 4294967168 }
 0x1f2   :  { %841 = vsyncpa [#allocation3], 1 }
 0x1f3   :  { %842 = vsyncpa [#allocation5], 1 }
 0x1f4   :  { %843 = vsyncpa [#allocation8], 1 }

</bundles_post_ra>
